<compile_context>
chip_gen: v6e
topology: v6e:2x2x1
jax: 0.10.0
libtpu: 0.0.40
codegen_flags: <defaults>
</compile_context>

<pallas_src>
import jax
import jax.numpy as jnp
from jax.experimental import pallas as pl
from jax.experimental.pallas import tpu as pltpu

IN_FEATURES = 2
H1 = 5       # layer1 out (Bilinear in1)
H2 = 10      # layer2 out (Bilinear in2)
OUT = 2      # Bilinear out


def net_kernel(x_ref, w1_ref, b1_ref, w2_ref, b2_ref, w3_ref, b3_ref, o_ref):
    # x_ref : (2, TB)   batch on lanes
    # w1_ref: (5, 2)    PyTorch layout        b1_ref: (5, 1)
    # w2_ref: (10, 2)                         b2_ref: (10, 1)
    # w3_ref: (5, 20)   w3_ref[i, o*10 + j] == W3[o, i, j]
    # b3_ref: (2, 1)
    # o_ref : (2, TB)   lane-dense output
    x0 = x_ref[0:1, :]                     # (1, TB)
    x1 = x_ref[1:2, :]                     # (1, TB)

    w1 = w1_ref[...]
    w2 = w2_ref[...]
    w3 = w3_ref[...]

    # layer1 / layer2 as VPU broadcast FMAs (a K=2 contraction would waste the MXU).
    h1 = w1[:, 0:1] * x0 + w1[:, 1:2] * x1 + b1_ref[...]   # (5,  TB)
    h2 = w2[:, 0:1] * x0 + w2[:, 1:2] * x1 + b2_ref[...]   # (10, TB)

    # layer3 (Bilinear): out[o,b] = sum_i h1[i,b] * (sum_j W3[o,i,j] * h2[j,b]) + b3[o]
    outs = []
    for o in range(OUT):                                    # static, tiny
        c = o * H2
        inner = w3[:, c:c + 1] * h2[0:1, :]                 # (5, TB)
        for j in range(1, H2):                              # static, tiny
            inner = inner + w3[:, c + j:c + j + 1] * h2[j:j + 1, :]
        outs.append(jnp.sum(h1 * inner, axis=0, keepdims=True))   # (1, TB) XLU reduce
    o_ref[...] = jnp.concatenate(outs, axis=0) + b3_ref[...]      # (2, TB)


def net_forward(x, params, *, block_b=512):
    """x: (B, 2) float32.  params: kernel-layout params from init_params."""
    w1, b1, w2, b2, w3, b3 = params
    B = x.shape[0]
    # Lane-aligned batch tile: at least 128, at most `block_b`.
    bb = min(block_b, ((B + 127) // 128) * 128)
    n_blocks = (B + bb - 1) // bb
    B_pad = n_blocks * bb

    # Layout glue in plain JAX: batch on lanes, zero-pad to the block size.
    x_t = jnp.zeros((IN_FEATURES, B_pad), jnp.float32).at[:, :B].set(x.T)

    def w_spec(shape):
        return pl.BlockSpec(shape, lambda i: (0, 0))

    out_t = pl.pallas_call(
        net_kernel,
        out_shape=jax.ShapeDtypeStruct((OUT, B_pad), jnp.float32),
        grid=(n_blocks,),
        in_specs=[
            pl.BlockSpec((IN_FEATURES, bb), lambda i: (0, i)),   # x tile
            w_spec((H1, IN_FEATURES)), w_spec((H1, 1)),          # layer1
            w_spec((H2, IN_FEATURES)), w_spec((H2, 1)),          # layer2
            w_spec((H1, OUT * H2)), w_spec((OUT, 1)),            # bilinear
        ],
        out_specs=pl.BlockSpec((OUT, bb), lambda i: (0, i)),
        compiler_params=pltpu.CompilerParams(
            dimension_semantics=("parallel",)),
    )(x_t, w1, b1, w2, b2, w3, b3)

    return out_t[:, :B].T                                        # (B, OUT)


def init_params(key):
    # Shapes match the PyTorch module:
    #   layer1: Linear(2, 5)      -> W (5,2),  b (5,)
    #   layer2: Linear(2, 10)     -> W (10,2), b (10,)
    #   layer3: Bilinear(5,10,2)  -> W (2,5,10), b (2,)
    ks = jax.random.split(key, 6)
    w1 = jax.random.uniform(ks[0], (H1, IN_FEATURES), jnp.float32, -0.5, 0.5)
    b1 = jax.random.uniform(ks[1], (H1,), jnp.float32, -0.5, 0.5)
    w2 = jax.random.uniform(ks[2], (H2, IN_FEATURES), jnp.float32, -0.5, 0.5)
    b2 = jax.random.uniform(ks[3], (H2,), jnp.float32, -0.5, 0.5)
    w3 = jax.random.uniform(ks[4], (OUT, H1, H2), jnp.float32, -0.5, 0.5)
    b3 = jax.random.uniform(ks[5], (OUT,), jnp.float32, -0.5, 0.5)

    # Kernel layout (glue in plain JAX):
    w1_k = w1                                  # (5, 2)  columns broadcast against x rows
    b1_k = b1.reshape(H1, 1)                   # (5, 1)
    w2_k = w2                                  # (10, 2)
    b2_k = b2.reshape(H2, 1)                   # (10, 1)
    # w3_k[i, o*H2 + j] == w3[o, i, j]  -> single dense (5, 20) tile
    w3_k = jnp.transpose(w3, (1, 0, 2)).reshape(H1, OUT * H2)
    b3_k = b3.reshape(OUT, 1)                  # (2, 1)
    return (w1_k, b1_k, w2_k, b2_k, w3_k, b3_k), (w1, b1, w2, b2, w3, b3)


def reference(x, raw_params):
    w1, b1, w2, b2, w3, b3 = raw_params
    x1 = x @ w1.T + b1
    x2 = x @ w2.T + b2
    return jnp.einsum("bi,oij,bj->bo", x1, w3, x2) + b3


if __name__ == "__main__":
    key = jax.random.PRNGKey(0)
    k_x, k_p = jax.random.split(key)
    B = 8
    x = jax.random.normal(k_x, (B, IN_FEATURES), jnp.float32)

    kernel_params, raw_params = init_params(k_p)

    out = net_forward(x, kernel_params)
    out = jax.block_until_ready(out)

    ref = reference(x, raw_params)
    assert out.shape == (B, OUT)
    assert jnp.allclose(out, ref, atol=1e-5, rtol=1e-5), (out, ref)
    print("KERNEL_OK")
</pallas_src>

<mosaic_0001>
module attributes {stable_mosaic.version = 11 : i64} {
  func.func @net_kernel(%arg0: i32, %arg1: memref<2x128xf32, #tpu.memory_space<vmem>>, %arg2: memref<5x2xf32, #tpu.memory_space<vmem>>, %arg3: memref<5x1xf32, #tpu.memory_space<vmem>>, %arg4: memref<10x2xf32, #tpu.memory_space<vmem>>, %arg5: memref<10x1xf32, #tpu.memory_space<vmem>>, %arg6: memref<5x20xf32, #tpu.memory_space<vmem>>, %arg7: memref<2x1xf32, #tpu.memory_space<vmem>>, %arg8: memref<2x128xf32, #tpu.memory_space<vmem>>) attributes {dimension_semantics = [#tpu.dimension_semantics<parallel>], iteration_bounds = array<i64: 1>, scalar_prefetch = 0 : i64, scratch_operands = 0 : i64, tpu.core_type = #tpu.core_type<tc>, window_params = [{transform_indices = @transform_0, window_bounds = array<i64: 2, 128>}, {pipeline_mode = #tpu.pipeline_mode<synchronous>, transform_indices = @transform_1, window_bounds = array<i64: 5, 2>}, {pipeline_mode = #tpu.pipeline_mode<synchronous>, transform_indices = @transform_2, window_bounds = array<i64: 5, 1>}, {pipeline_mode = #tpu.pipeline_mode<synchronous>, transform_indices = @transform_3, window_bounds = array<i64: 10, 2>}, {pipeline_mode = #tpu.pipeline_mode<synchronous>, transform_indices = @transform_4, window_bounds = array<i64: 10, 1>}, {pipeline_mode = #tpu.pipeline_mode<synchronous>, transform_indices = @transform_5, window_bounds = array<i64: 5, 20>}, {pipeline_mode = #tpu.pipeline_mode<synchronous>, transform_indices = @transform_6, window_bounds = array<i64: 2, 1>}, {transform_indices = @transform_7, window_bounds = array<i64: 2, 128>}]} {
    %c0 = arith.constant 0 : index
    %c0_0 = arith.constant 0 : index
    %0 = vector.load %arg1[%c0, %c0_0] : memref<2x128xf32, #tpu.memory_space<vmem>>, vector<1x128xf32>
    %c1 = arith.constant 1 : index
    %c0_1 = arith.constant 0 : index
    %1 = vector.load %arg1[%c1, %c0_1] : memref<2x128xf32, #tpu.memory_space<vmem>>, vector<1x128xf32>
    %c0_2 = arith.constant 0 : index
    %c0_3 = arith.constant 0 : index
    %2 = vector.load %arg2[%c0_2, %c0_3] : memref<5x2xf32, #tpu.memory_space<vmem>>, vector<5x2xf32>
    %c0_4 = arith.constant 0 : index
    %c0_5 = arith.constant 0 : index
    %3 = vector.load %arg4[%c0_4, %c0_5] : memref<10x2xf32, #tpu.memory_space<vmem>>, vector<10x2xf32>
    %c0_6 = arith.constant 0 : index
    %c0_7 = arith.constant 0 : index
    %4 = vector.load %arg6[%c0_6, %c0_7] : memref<5x20xf32, #tpu.memory_space<vmem>>, vector<5x20xf32>
    %5 = vector.extract_strided_slice %2 {offsets = [0, 0], sizes = [5, 1], strides = [1, 1]} : vector<5x2xf32> to vector<5x1xf32>
    %6 = vector.broadcast %5 : vector<5x1xf32> to vector<5x128xf32>
    %7 = vector.broadcast %0 : vector<1x128xf32> to vector<5x128xf32>
    %8 = arith.mulf %6, %7 : vector<5x128xf32>
    %9 = vector.extract_strided_slice %2 {offsets = [0, 1], sizes = [5, 1], strides = [1, 1]} : vector<5x2xf32> to vector<5x1xf32>
    %10 = vector.broadcast %9 : vector<5x1xf32> to vector<5x128xf32>
    %11 = vector.broadcast %1 : vector<1x128xf32> to vector<5x128xf32>
    %12 = arith.mulf %10, %11 : vector<5x128xf32>
    %13 = arith.addf %8, %12 : vector<5x128xf32>
    %c0_8 = arith.constant 0 : index
    %c0_9 = arith.constant 0 : index
    %14 = vector.load %arg3[%c0_8, %c0_9] : memref<5x1xf32, #tpu.memory_space<vmem>>, vector<5x1xf32>
    %15 = vector.broadcast %14 : vector<5x1xf32> to vector<5x128xf32>
    %16 = arith.addf %13, %15 : vector<5x128xf32>
    %17 = vector.extract_strided_slice %3 {offsets = [0, 0], sizes = [10, 1], strides = [1, 1]} : vector<10x2xf32> to vector<10x1xf32>
    %18 = vector.broadcast %17 : vector<10x1xf32> to vector<10x128xf32>
    %19 = vector.broadcast %0 : vector<1x128xf32> to vector<10x128xf32>
    %20 = arith.mulf %18, %19 : vector<10x128xf32>
    %21 = vector.extract_strided_slice %3 {offsets = [0, 1], sizes = [10, 1], strides = [1, 1]} : vector<10x2xf32> to vector<10x1xf32>
    %22 = vector.broadcast %21 : vector<10x1xf32> to vector<10x128xf32>
    %23 = vector.broadcast %1 : vector<1x128xf32> to vector<10x128xf32>
    %24 = arith.mulf %22, %23 : vector<10x128xf32>
    %25 = arith.addf %20, %24 : vector<10x128xf32>
    %c0_10 = arith.constant 0 : index
    %c0_11 = arith.constant 0 : index
    %26 = vector.load %arg5[%c0_10, %c0_11] : memref<10x1xf32, #tpu.memory_space<vmem>>, vector<10x1xf32>
    %27 = vector.broadcast %26 : vector<10x1xf32> to vector<10x128xf32>
    %28 = arith.addf %25, %27 : vector<10x128xf32>
    %29 = vector.extract_strided_slice %4 {offsets = [0, 0], sizes = [5, 1], strides = [1, 1]} : vector<5x20xf32> to vector<5x1xf32>
    %30 = vector.extract_strided_slice %28 {offsets = [0, 0], sizes = [1, 128], strides = [1, 1]} : vector<10x128xf32> to vector<1x128xf32>
    %31 = vector.broadcast %29 : vector<5x1xf32> to vector<5x128xf32>
    %32 = vector.broadcast %30 : vector<1x128xf32> to vector<5x128xf32>
    %33 = arith.mulf %31, %32 : vector<5x128xf32>
    %34 = vector.extract_strided_slice %4 {offsets = [0, 1], sizes = [5, 1], strides = [1, 1]} : vector<5x20xf32> to vector<5x1xf32>
    %35 = vector.extract_strided_slice %28 {offsets = [1, 0], sizes = [1, 128], strides = [1, 1]} : vector<10x128xf32> to vector<1x128xf32>
    %36 = vector.broadcast %34 : vector<5x1xf32> to vector<5x128xf32>
    %37 = vector.broadcast %35 : vector<1x128xf32> to vector<5x128xf32>
    %38 = arith.mulf %36, %37 : vector<5x128xf32>
    %39 = arith.addf %33, %38 : vector<5x128xf32>
    %40 = vector.extract_strided_slice %4 {offsets = [0, 2], sizes = [5, 1], strides = [1, 1]} : vector<5x20xf32> to vector<5x1xf32>
    %41 = vector.extract_strided_slice %28 {offsets = [2, 0], sizes = [1, 128], strides = [1, 1]} : vector<10x128xf32> to vector<1x128xf32>
    %42 = vector.broadcast %40 : vector<5x1xf32> to vector<5x128xf32>
    %43 = vector.broadcast %41 : vector<1x128xf32> to vector<5x128xf32>
    %44 = arith.mulf %42, %43 : vector<5x128xf32>
    %45 = arith.addf %39, %44 : vector<5x128xf32>
    %46 = vector.extract_strided_slice %4 {offsets = [0, 3], sizes = [5, 1], strides = [1, 1]} : vector<5x20xf32> to vector<5x1xf32>
    %47 = vector.extract_strided_slice %28 {offsets = [3, 0], sizes = [1, 128], strides = [1, 1]} : vector<10x128xf32> to vector<1x128xf32>
    %48 = vector.broadcast %46 : vector<5x1xf32> to vector<5x128xf32>
    %49 = vector.broadcast %47 : vector<1x128xf32> to vector<5x128xf32>
    %50 = arith.mulf %48, %49 : vector<5x128xf32>
    %51 = arith.addf %45, %50 : vector<5x128xf32>
    %52 = vector.extract_strided_slice %4 {offsets = [0, 4], sizes = [5, 1], strides = [1, 1]} : vector<5x20xf32> to vector<5x1xf32>
    %53 = vector.extract_strided_slice %28 {offsets = [4, 0], sizes = [1, 128], strides = [1, 1]} : vector<10x128xf32> to vector<1x128xf32>
    %54 = vector.broadcast %52 : vector<5x1xf32> to vector<5x128xf32>
    %55 = vector.broadcast %53 : vector<1x128xf32> to vector<5x128xf32>
    %56 = arith.mulf %54, %55 : vector<5x128xf32>
    %57 = arith.addf %51, %56 : vector<5x128xf32>
    %58 = vector.extract_strided_slice %4 {offsets = [0, 5], sizes = [5, 1], strides = [1, 1]} : vector<5x20xf32> to vector<5x1xf32>
    %59 = vector.extract_strided_slice %28 {offsets = [5, 0], sizes = [1, 128], strides = [1, 1]} : vector<10x128xf32> to vector<1x128xf32>
    %60 = vector.broadcast %58 : vector<5x1xf32> to vector<5x128xf32>
    %61 = vector.broadcast %59 : vector<1x128xf32> to vector<5x128xf32>
    %62 = arith.mulf %60, %61 : vector<5x128xf32>
    %63 = arith.addf %57, %62 : vector<5x128xf32>
    %64 = vector.extract_strided_slice %4 {offsets = [0, 6], sizes = [5, 1], strides = [1, 1]} : vector<5x20xf32> to vector<5x1xf32>
    %65 = vector.extract_strided_slice %28 {offsets = [6, 0], sizes = [1, 128], strides = [1, 1]} : vector<10x128xf32> to vector<1x128xf32>
    %66 = vector.broadcast %64 : vector<5x1xf32> to vector<5x128xf32>
    %67 = vector.broadcast %65 : vector<1x128xf32> to vector<5x128xf32>
    %68 = arith.mulf %66, %67 : vector<5x128xf32>
    %69 = arith.addf %63, %68 : vector<5x128xf32>
    %70 = vector.extract_strided_slice %4 {offsets = [0, 7], sizes = [5, 1], strides = [1, 1]} : vector<5x20xf32> to vector<5x1xf32>
    %71 = vector.extract_strided_slice %28 {offsets = [7, 0], sizes = [1, 128], strides = [1, 1]} : vector<10x128xf32> to vector<1x128xf32>
    %72 = vector.broadcast %70 : vector<5x1xf32> to vector<5x128xf32>
    %73 = vector.broadcast %71 : vector<1x128xf32> to vector<5x128xf32>
    %74 = arith.mulf %72, %73 : vector<5x128xf32>
    %75 = arith.addf %69, %74 : vector<5x128xf32>
    %76 = vector.extract_strided_slice %4 {offsets = [0, 8], sizes = [5, 1], strides = [1, 1]} : vector<5x20xf32> to vector<5x1xf32>
    %77 = vector.extract_strided_slice %28 {offsets = [8, 0], sizes = [1, 128], strides = [1, 1]} : vector<10x128xf32> to vector<1x128xf32>
    %78 = vector.broadcast %76 : vector<5x1xf32> to vector<5x128xf32>
    %79 = vector.broadcast %77 : vector<1x128xf32> to vector<5x128xf32>
    %80 = arith.mulf %78, %79 : vector<5x128xf32>
    %81 = arith.addf %75, %80 : vector<5x128xf32>
    %82 = vector.extract_strided_slice %4 {offsets = [0, 9], sizes = [5, 1], strides = [1, 1]} : vector<5x20xf32> to vector<5x1xf32>
    %83 = vector.extract_strided_slice %28 {offsets = [9, 0], sizes = [1, 128], strides = [1, 1]} : vector<10x128xf32> to vector<1x128xf32>
    %84 = vector.broadcast %82 : vector<5x1xf32> to vector<5x128xf32>
    %85 = vector.broadcast %83 : vector<1x128xf32> to vector<5x128xf32>
    %86 = arith.mulf %84, %85 : vector<5x128xf32>
    %87 = arith.addf %81, %86 : vector<5x128xf32>
    %88 = arith.mulf %16, %87 : vector<5x128xf32>
    %cst = arith.constant dense<0.000000e+00> : vector<128xf32>
    %89 = vector.multi_reduction <add>, %88, %cst [0] : vector<5x128xf32> to vector<128xf32>
    %90 = vector.shape_cast %89 : vector<128xf32> to vector<1x128xf32>
    %91 = vector.extract_strided_slice %4 {offsets = [0, 10], sizes = [5, 1], strides = [1, 1]} : vector<5x20xf32> to vector<5x1xf32>
    %92 = vector.extract_strided_slice %28 {offsets = [0, 0], sizes = [1, 128], strides = [1, 1]} : vector<10x128xf32> to vector<1x128xf32>
    %93 = vector.broadcast %91 : vector<5x1xf32> to vector<5x128xf32>
    %94 = vector.broadcast %92 : vector<1x128xf32> to vector<5x128xf32>
    %95 = arith.mulf %93, %94 : vector<5x128xf32>
    %96 = vector.extract_strided_slice %4 {offsets = [0, 11], sizes = [5, 1], strides = [1, 1]} : vector<5x20xf32> to vector<5x1xf32>
    %97 = vector.extract_strided_slice %28 {offsets = [1, 0], sizes = [1, 128], strides = [1, 1]} : vector<10x128xf32> to vector<1x128xf32>
    %98 = vector.broadcast %96 : vector<5x1xf32> to vector<5x128xf32>
    %99 = vector.broadcast %97 : vector<1x128xf32> to vector<5x128xf32>
    %100 = arith.mulf %98, %99 : vector<5x128xf32>
    %101 = arith.addf %95, %100 : vector<5x128xf32>
    %102 = vector.extract_strided_slice %4 {offsets = [0, 12], sizes = [5, 1], strides = [1, 1]} : vector<5x20xf32> to vector<5x1xf32>
    %103 = vector.extract_strided_slice %28 {offsets = [2, 0], sizes = [1, 128], strides = [1, 1]} : vector<10x128xf32> to vector<1x128xf32>
    %104 = vector.broadcast %102 : vector<5x1xf32> to vector<5x128xf32>
    %105 = vector.broadcast %103 : vector<1x128xf32> to vector<5x128xf32>
    %106 = arith.mulf %104, %105 : vector<5x128xf32>
    %107 = arith.addf %101, %106 : vector<5x128xf32>
    %108 = vector.extract_strided_slice %4 {offsets = [0, 13], sizes = [5, 1], strides = [1, 1]} : vector<5x20xf32> to vector<5x1xf32>
    %109 = vector.extract_strided_slice %28 {offsets = [3, 0], sizes = [1, 128], strides = [1, 1]} : vector<10x128xf32> to vector<1x128xf32>
    %110 = vector.broadcast %108 : vector<5x1xf32> to vector<5x128xf32>
    %111 = vector.broadcast %109 : vector<1x128xf32> to vector<5x128xf32>
    %112 = arith.mulf %110, %111 : vector<5x128xf32>
    %113 = arith.addf %107, %112 : vector<5x128xf32>
    %114 = vector.extract_strided_slice %4 {offsets = [0, 14], sizes = [5, 1], strides = [1, 1]} : vector<5x20xf32> to vector<5x1xf32>
    %115 = vector.extract_strided_slice %28 {offsets = [4, 0], sizes = [1, 128], strides = [1, 1]} : vector<10x128xf32> to vector<1x128xf32>
    %116 = vector.broadcast %114 : vector<5x1xf32> to vector<5x128xf32>
    %117 = vector.broadcast %115 : vector<1x128xf32> to vector<5x128xf32>
    %118 = arith.mulf %116, %117 : vector<5x128xf32>
    %119 = arith.addf %113, %118 : vector<5x128xf32>
    %120 = vector.extract_strided_slice %4 {offsets = [0, 15], sizes = [5, 1], strides = [1, 1]} : vector<5x20xf32> to vector<5x1xf32>
    %121 = vector.extract_strided_slice %28 {offsets = [5, 0], sizes = [1, 128], strides = [1, 1]} : vector<10x128xf32> to vector<1x128xf32>
    %122 = vector.broadcast %120 : vector<5x1xf32> to vector<5x128xf32>
    %123 = vector.broadcast %121 : vector<1x128xf32> to vector<5x128xf32>
    %124 = arith.mulf %122, %123 : vector<5x128xf32>
    %125 = arith.addf %119, %124 : vector<5x128xf32>
    %126 = vector.extract_strided_slice %4 {offsets = [0, 16], sizes = [5, 1], strides = [1, 1]} : vector<5x20xf32> to vector<5x1xf32>
    %127 = vector.extract_strided_slice %28 {offsets = [6, 0], sizes = [1, 128], strides = [1, 1]} : vector<10x128xf32> to vector<1x128xf32>
    %128 = vector.broadcast %126 : vector<5x1xf32> to vector<5x128xf32>
    %129 = vector.broadcast %127 : vector<1x128xf32> to vector<5x128xf32>
    %130 = arith.mulf %128, %129 : vector<5x128xf32>
    %131 = arith.addf %125, %130 : vector<5x128xf32>
    %132 = vector.extract_strided_slice %4 {offsets = [0, 17], sizes = [5, 1], strides = [1, 1]} : vector<5x20xf32> to vector<5x1xf32>
    %133 = vector.extract_strided_slice %28 {offsets = [7, 0], sizes = [1, 128], strides = [1, 1]} : vector<10x128xf32> to vector<1x128xf32>
    %134 = vector.broadcast %132 : vector<5x1xf32> to vector<5x128xf32>
    %135 = vector.broadcast %133 : vector<1x128xf32> to vector<5x128xf32>
    %136 = arith.mulf %134, %135 : vector<5x128xf32>
    %137 = arith.addf %131, %136 : vector<5x128xf32>
    %138 = vector.extract_strided_slice %4 {offsets = [0, 18], sizes = [5, 1], strides = [1, 1]} : vector<5x20xf32> to vector<5x1xf32>
    %139 = vector.extract_strided_slice %28 {offsets = [8, 0], sizes = [1, 128], strides = [1, 1]} : vector<10x128xf32> to vector<1x128xf32>
    %140 = vector.broadcast %138 : vector<5x1xf32> to vector<5x128xf32>
    %141 = vector.broadcast %139 : vector<1x128xf32> to vector<5x128xf32>
    %142 = arith.mulf %140, %141 : vector<5x128xf32>
    %143 = arith.addf %137, %142 : vector<5x128xf32>
    %144 = vector.extract_strided_slice %4 {offsets = [0, 19], sizes = [5, 1], strides = [1, 1]} : vector<5x20xf32> to vector<5x1xf32>
    %145 = vector.extract_strided_slice %28 {offsets = [9, 0], sizes = [1, 128], strides = [1, 1]} : vector<10x128xf32> to vector<1x128xf32>
    %146 = vector.broadcast %144 : vector<5x1xf32> to vector<5x128xf32>
    %147 = vector.broadcast %145 : vector<1x128xf32> to vector<5x128xf32>
    %148 = arith.mulf %146, %147 : vector<5x128xf32>
    %149 = arith.addf %143, %148 : vector<5x128xf32>
    %150 = arith.mulf %16, %149 : vector<5x128xf32>
    %cst_12 = arith.constant dense<0.000000e+00> : vector<128xf32>
    %151 = vector.multi_reduction <add>, %150, %cst_12 [0] : vector<5x128xf32> to vector<128xf32>
    %152 = vector.shape_cast %151 : vector<128xf32> to vector<1x128xf32>
    %153 = tpu.concatenate %90, %152 in 0 : vector<1x128xf32>, vector<1x128xf32> -> vector<2x128xf32>
    %c0_13 = arith.constant 0 : index
    %c0_14 = arith.constant 0 : index
    %154 = vector.load %arg7[%c0_13, %c0_14] : memref<2x1xf32, #tpu.memory_space<vmem>>, vector<2x1xf32>
    %155 = vector.broadcast %154 : vector<2x1xf32> to vector<2x128xf32>
    %156 = arith.addf %153, %155 : vector<2x128xf32>
    %c0_15 = arith.constant 0 : index
    %c0_16 = arith.constant 0 : index
    %157 = vector.load %arg8[%c0_15, %c0_16] : memref<2x128xf32, #tpu.memory_space<vmem>>, vector<2x128xf32>
    tpu.vector_store %arg8[%c0_15, %c0_16], %156 {strides = array<i32>} : memref<2x128xf32, #tpu.memory_space<vmem>>, vector<2x128xf32>,
    return
  }
  func.func @transform_0(%arg0: i32) -> (i32, i32) {
    %c0_i32 = arith.constant 0 : i32
    %c0_i32_0 = arith.constant 0 : i32
    return %c0_i32, %arg0 : i32, i32
  }
  func.func @transform_1(%arg0: i32) -> (i32, i32) {
    %c0_i32 = arith.constant 0 : i32
    %c0_i32_0 = arith.constant 0 : i32
    %c0_i32_1 = arith.constant 0 : i32
    return %c0_i32, %c0_i32_0 : i32, i32
  }
  func.func @transform_2(%arg0: i32) -> (i32, i32) {
    %c0_i32 = arith.constant 0 : i32
    %c0_i32_0 = arith.constant 0 : i32
    %c0_i32_1 = arith.constant 0 : i32
    return %c0_i32, %c0_i32_0 : i32, i32
  }
  func.func @transform_3(%arg0: i32) -> (i32, i32) {
    %c0_i32 = arith.constant 0 : i32
    %c0_i32_0 = arith.constant 0 : i32
    %c0_i32_1 = arith.constant 0 : i32
    return %c0_i32, %c0_i32_0 : i32, i32
  }
  func.func @transform_4(%arg0: i32) -> (i32, i32) {
    %c0_i32 = arith.constant 0 : i32
    %c0_i32_0 = arith.constant 0 : i32
    %c0_i32_1 = arith.constant 0 : i32
    return %c0_i32, %c0_i32_0 : i32, i32
  }
  func.func @transform_5(%arg0: i32) -> (i32, i32) {
    %c0_i32 = arith.constant 0 : i32
    %c0_i32_0 = arith.constant 0 : i32
    %c0_i32_1 = arith.constant 0 : i32
    return %c0_i32, %c0_i32_0 : i32, i32
  }
  func.func @transform_6(%arg0: i32) -> (i32, i32) {
    %c0_i32 = arith.constant 0 : i32
    %c0_i32_0 = arith.constant 0 : i32
    %c0_i32_1 = arith.constant 0 : i32
    return %c0_i32, %c0_i32_0 : i32, i32
  }
  func.func @transform_7(%arg0: i32) -> (i32, i32) {
    %c0_i32 = arith.constant 0 : i32
    %c0_i32_0 = arith.constant 0 : i32
    return %c0_i32, %arg0 : i32, i32
  }
}

</mosaic_0001>

<bundles_post_ra>
// kernel: tpu_custom_call.1
= control target key start
LH: loop header
LB: loop body
LE: loop exit
PB: predicated region body
PF: predicated region fallthrough
CT: control target
= control target key end

     0   :  { %v369_v2 = vmov 1   ;;  %v370_v3 = vmov 0   ;;  %v371_v6 = vmov 10   ;;  %s501_s0 = inlined_call_operand.vmem [shape: f32[2,128], index: 0, kind: input, shape index: {}]   ;;  %s502_s1 = inlined_call_operand.vmem [shape: f32[5,2], index: 1, kind: input, shape index: {}]   ;;  %s503_s2 = inlined_call_operand.vmem [shape: f32[5,1], index: 2, kind: input, shape index: {}]   ;;  %s504_s3 = inlined_call_operand.vmem [shape: f32[10,2], index: 3, kind: input, shape index: {}]   ;;  %s505_s4 = inlined_call_operand.vmem [shape: f32[10,1], index: 4, kind: input, shape index: {}]   ;;  %s506_s5 = inlined_call_operand.vmem [shape: f32[5,20], index: 5, kind: input, shape index: {}]   ;;  %s507_s6 = inlined_call_operand.vmem [shape: f32[2,1], index: 6, kind: input, shape index: {}]   ;;  %s508_s7 = inlined_call_operand.hbm [shape: f32[2,128], index: 7, kind: output, shape index: {}]  }
   0x1   :  { %v53_v0 = vld [vmem:[%s503_s2] sm:$0x1f]  ;;  %321 = vset.pattern.permute.xlu0 %v369_v2  ;;  %322 = vset.pattern.permute.xlu1 %v370_v3 }
   0x2   :  { %v29_v1 = vld [vmem:[%s502_s1] sm:$0x1f]  ;;  %56 = vperm.xlu1 %322, %v53_v0  }
   0x3   :  { %44 = vperm.xlu0 %321, %v29_v1   ;;  %v30_v4 = vld [vmem:[%s504_s3] sm:$0xff] }
   0x4   :  { %v442_v5 = vld [vmem:[%s506_s5] sm:$0x1f] }
   0x6   :  { %62 = vperm.xlu1 %322, %v30_v4  }
   0x7   :  { %326 = vset.pattern.permute.xlu0 %v371_v6 }
   0x8   :  { %12 = vsyncpa [#allocation3], 0  ;;  %208 = vperm.xlu0 %326, %v442_v5   ;;  %v372_v7 = vmov 12   ;;  %v373_v8 = vmov 14   ;;  %v84_v9 = vld [vmem:[%s505_s4] sm:$0xff]  ;;  %v374_v10 = vmov 11   ;;  %v103_v44 = vlaneseq }
   0x9   :  { %v31_v11 = vld [vmem:[%s504_s3 + $0x8] sm:$0x3]  ;;  %v375_v12 = vmov 2   ;;  %v376_v14 = vmov 3   ;;  %v377_v15 = vmov 7   ;;  %v378_v16 = vmov 13  }
   0xa   :  { %323 = vset.pattern.permute.xlu1 %v369_v2  ;;  %v85_v13 = vld [vmem:[%s505_s4 + $0x8] sm:$0x3]  ;;  %v379_v17 = vmov 18   ;;  %v276_v18 = vld [vmem:[%s507_s6] sm:$0x3]  ;;  %v380_v19 = vmov 4  }
   0xb   :  { %73 = vperm.xlu1 %323, %v30_v4   ;;  %v381_v20 = vmov 5   ;;  %v382_v21 = vmov 15   ;;  %v383_v22 = vmov 6   ;;  %v384_v23 = vmov 16   ;;  %v299_v42 = vld [vmem:[%s501_s0 + $0x1] ss:$0 sm:$0xff] }
   0xc   :  { %329 = vset.pattern.permute.xlu0 %v372_v7  ;;  %v385_v24 = vmov 17   ;;  %v386_v25 = vmov 8   ;;  %v387_v26 = vmov 9   ;;  %v388_v27 = vmov 19   ;;  %v298_v45 = vld [vmem:[%s501_s0] ss:$0 sm:$0xff] }
   0xd   :  { %219 = vperm.xlu0 %329, %v442_v5   ;;  %v486_v49 = vshrl.u32 %v103_v44, 7  ;;  %vm199_vm0 = vcmask 1044480   ;;  %vm274_vm1 = vcmask 1040384   ;;  %s389_s0 = smov [#allocation2]  }
   0xe   :  { %s290_s15 = sshll.u32 %s389_s0, 4  ;;  %s291_s15 = int_to_ptr.vmem [resolvable:$true] %s290_s15 }
   0xf   :  { %324 = vset.pattern.permute.xlu1 %v370_v3  ;;  %v105_v54 = vsub.s32 0, %v486_v49  ;;  %v114_v55 = vsub.s32 1, %v486_v49  ;;  %v124_v56 = vsub.s32 2, %v486_v49  ;;  %v134_v60 = vsub.s32 3, %v486_v49  ;;  %s347_s16 = scalar_lea.vmem %s291_s15, 32  ;;  %p352_p1 = scmp.lt.s32.totalorder %s291_s15, %s291_s15 }
  0x10   :  { %100 = vperm.xlu1 %324, %v442_v5   ;;  %v154_v6 = vsub.s32 5, %v486_v49  ;;  %p348_p0 = scmp.ne.s32.totalorder %s291_s15, %s347_s16  ;;  %p353_p2 = scmp.lt.s32.totalorder %s347_s16, %s347_s16 }
  0x11   :  { %334 = vset.pattern.permute.xlu0 %v373_v8 }
  0x12   :  { %231 = vperm.xlu0 %334, %v442_v5   ;;  %p354_p3 = por %p353_p2, %p352_p1 }
  0x14   :  { %325 = vset.pattern.permute.xlu1 %v369_v2  ;;  %p355_p4 = pnand %p354_p3, %p348_p0 }
  0x15   :  { %109 = vperm.xlu1 %325, %v442_v5  }
  0x16   :  { %335 = vset.pattern.permute.xlu0 %v370_v3 }
  0x17   :  { %35 = vperm.xlu0 %335, %v29_v1   ;;  %v144_v1 = vsub.s32 4, %v486_v49 }
  0x19   :  { %327 = vset.pattern.permute.xlu1 %v374_v10 }
  0x1a   :  { %213 = vperm.xlu1 %327, %v442_v5  }
  0x1b   :  { %88 = vperm.xlu0 %335, %v84_v9  }
  0x1e   :  { %328 = vset.pattern.permute.xlu1 %v375_v12 }
  0x1f   :  { %67 = vperm.xlu0 %335, %v31_v11   ;;  %119 = vperm.xlu1 %328, %v442_v5  }
  0x23   :  { %93 = vperm.xlu0 %335, %v85_v13   ;;  %330 = vset.pattern.permute.xlu1 %v376_v14  ;;  %v164_v13 = vsub.s32 6, %v486_v49 }
  0x24   :  { %129 = vperm.xlu1 %330, %v442_v5  }
  0x27   :  { %340 = vset.pattern.permute.xlu0 %v377_v15 }
  0x28   :  { %169 = vperm.xlu0 %340, %v442_v5   ;;  %331 = vset.pattern.permute.xlu1 %v378_v16 }
  0x29   :  { %225 = vperm.xlu1 %331, %v442_v5  }
  0x2c   :  { %343 = vset.pattern.permute.xlu0 %v379_v17 }
  0x2d   :  { %255 = vperm.xlu0 %343, %v442_v5   ;;  %332 = vset.pattern.permute.xlu1 %v369_v2 }
  0x2e   :  { %77 = vperm.xlu1 %332, %v31_v11  }
  0x31   :  { %346 = vset.pattern.permute.xlu0 %v370_v3 }
  0x32   :  { %279 = vperm.xlu0 %346, %v276_v18   ;;  %333 = vset.pattern.permute.xlu1 %v380_v19 }
  0x33   :  { %139 = vperm.xlu1 %333, %v442_v5  }
  0x37   :  { %336 = vset.pattern.permute.xlu1 %v381_v20 }
  0x38   :  { %149 = vperm.xlu1 %336, %v442_v5  }
  0x3c   :  { %337 = vset.pattern.permute.xlu1 %v382_v21 }
  0x3d   :  { %237 = vperm.xlu1 %337, %v442_v5  }
  0x41   :  { %338 = vset.pattern.permute.xlu1 %v383_v22 }
  0x42   :  { %159 = vperm.xlu1 %338, %v442_v5  }
  0x46   :  { %339 = vset.pattern.permute.xlu1 %v384_v23 }
  0x47   :  { %243 = vperm.xlu1 %339, %v442_v5  }
  0x4b   :  { %341 = vset.pattern.permute.xlu1 %v385_v24 }
  0x4c   :  { %249 = vperm.xlu1 %341, %v442_v5  }
  0x50   :  { %342 = vset.pattern.permute.xlu1 %v386_v25 }
  0x51   :  { %179 = vperm.xlu1 %342, %v442_v5  }
  0x55   :  { %344 = vset.pattern.permute.xlu1 %v387_v26 }
  0x56   :  { %189 = vperm.xlu1 %344, %v442_v5  }
  0x5a   :  { %345 = vset.pattern.permute.xlu1 %v388_v27 }
  0x5b   :  { %261 = vperm.xlu1 %345, %v442_v5  }
  0x7d   :  { %v476_v28 = vpop.permute.xlu1 %56 }
  0x7e   :  { %v478_v33 = vpop.permute.xlu0 %44 }
  0x81   :  { %v63_v29 = vpop.permute.xlu1 %62 }
  0x82   :  { %v70_v48 = vmul.f32 %v298_v45, %v63_v29  ;;  %v174_v29 = vsub.s32 7, %v486_v49 }
  0x83   :  { %v209_v35 = vpop.permute.xlu0 %208 }
  0x86   :  { %v74_v30 = vpop.permute.xlu1 %73 }
  0x87   :  { %v80_v46 = vmul.f32 %v299_v42, %v74_v30 }
  0x88   :  { %v220_v37 = vpop.permute.xlu0 %219 }
  0x89   :  { %v82_v51 = vadd.f32 %v80_v46, %v70_v48 }
  0x8b   :  { %v101_v31 = vpop.permute.xlu1 %100 }
  0x8d   :  { %v232_v40 = vpop.permute.xlu0 %231 }
  0x90   :  { %v110_v32 = vpop.permute.xlu1 %109 }
  0x92   :  { %v36_v43 = vpop.permute.xlu0 %35 }
  0x95   :  { %v214_v34 = vpop.permute.xlu1 %213 }
  0x96   :  { %v89_v50 = vpop.permute.xlu0 %88 }
  0x97   :  { %v96_v53 = vadd.f32 %v89_v50, %v82_v51 }
  0x99   :  { %v106_v57 = vrot.slane %v96_v53, %v105_v54  ;;  %v115_v58 = vrot.slane %v96_v53, %v114_v55  ;;  %v125_v63 = vrot.slane %v96_v53, %v124_v56  ;;  %v135_v3 = vrot.slane %v96_v53, %v134_v60 }
  0x9a   :  { %v120_v36 = vpop.permute.xlu1 %119  ;;  %v68_v2 = vpop.permute.xlu0 %67  ;;  %v145_v12 = vrot.slane %v96_v53, %v144_v1  ;;  %v155_v19 = vrot.slane %v96_v53, %v154_v6  ;;  %v165_v25 = vrot.slane %v96_v53, %v164_v13  ;;  %v175_v46 = vrot.slane %v96_v53, %v174_v29 }
  0x9b   :  { %v107_v61 = vmul.f32 %v106_v57, %v101_v31  ;;  %v116_v62 = vmul.f32 %v115_v58, %v110_v32  ;;  %v211_v4 = vmul.f32 %v209_v35, %v106_v57  ;;  %v216_v5 = vmul.f32 %v214_v34, %v115_v58 }
  0x9c   :  { %v126_v8 = vmul.f32 %v125_v63, %v120_v36  ;;  %v71_v9 = vmul.f32 %v298_v45, %v68_v2  ;;  %v222_v20 = vmul.f32 %v220_v37, %v125_v63  ;;  %v51_v36 = vmul.f32 %v299_v42, %v478_v33 }
  0x9d   :  { %v117_v7 = vadd.f32 %v116_v62, %v107_v61  ;;  %v217_v15 = vadd.f32 %v216_v5, %v211_v4  ;;  %v42_v37 = vmul.f32 %v298_v45, %v36_v43 }
  0x9e   :  { %v94_v21 = vpop.permute.xlu0 %93 }
  0x9f   :  { %v130_v38 = vpop.permute.xlu1 %129  ;;  %v127_v16 = vadd.f32 %v126_v8, %v117_v7  ;;  %v223_v26 = vadd.f32 %v222_v20, %v217_v15  ;;  %v52_v58 = vadd.f32 %v51_v36, %v42_v37 }
  0xa0   :  { %v136_v11 = vmul.f32 %v135_v3, %v130_v38 }
  0xa1   :  { %v59_v43 = vadd.f32 %v476_v28, %v52_v58 }
  0xa2   :  { %v137_v23 = vadd.f32 %v136_v11, %v127_v16 }
  0xa3   :  { %v170_v38 = vpop.permute.xlu0 %169 }
  0xa4   :  { %v226_v39 = vpop.permute.xlu1 %225 }
  0xa5   :  { %v228_v22 = vmul.f32 %v226_v39, %v135_v3 }
  0xa7   :  { %v229_v34 = vadd.f32 %v228_v22, %v223_v26 }
  0xa8   :  { %v256_v33 = vpop.permute.xlu0 %255 }
  0xa9   :  { %v78_v41 = vpop.permute.xlu1 %77 }
  0xaa   :  { %v81_v10 = vmul.f32 %v299_v42, %v78_v41  ;;  %v234_v41 = vmul.f32 %v232_v40, %v145_v12 }
  0xac   :  { %v83_v17 = vadd.f32 %v81_v10, %v71_v9  ;;  %v235_v50 = vadd.f32 %v234_v41, %v229_v34 }
  0xad   :  { %v280_v15 = vpop.permute.xlu0 %279 }
  0xae   :  { %v140_v47 = vpop.permute.xlu1 %139  ;;  %v97_v31 = vadd.f32 %v94_v21, %v83_v17 }
  0xaf   :  { %v146_v18 = vmul.f32 %v145_v12, %v140_v47 }
  0xb0   :  { %v185_v39 = vrot.slane %v97_v31, %v105_v54  ;;  %v195_v61 = vrot.slane %v97_v31, %v114_v55 }
  0xb1   :  { %v147_v30 = vadd.f32 %v146_v18, %v137_v23 }
  0xb2   :  { %v258_v53 = vmul.f32 %v256_v33, %v185_v39 }
  0xb3   :  { %v150_v52 = vpop.permute.xlu1 %149 }
  0xb4   :  { %v156_v24 = vmul.f32 %v155_v19, %v150_v52  ;;  %v176_v52 = vmul.f32 %v175_v46, %v170_v38 }
  0xb6   :  { %v157_v35 = vadd.f32 %v156_v24, %v147_v30 }
  0xb8   :  { %v238_v59 = vpop.permute.xlu1 %237 }
  0xb9   :  { %v240_v44 = vmul.f32 %v238_v59, %v155_v19 }
  0xbb   :  { %v241_v49 = vadd.f32 %v240_v44, %v235_v50 }
  0xbd   :  { %v160_v0 = vpop.permute.xlu1 %159 }
  0xbe   :  { %v166_v32 = vmul.f32 %v165_v25, %v160_v0 }
  0xc0   :  { %v167_v47 = vadd.f32 %v166_v32, %v157_v35 }
  0xc2   :  { %v244_v14 = vpop.permute.xlu1 %243  ;;  %v177_v60 = vadd.f32 %v176_v52, %v167_v47 }
  0xc3   :  { %v246_v51 = vmul.f32 %v244_v14, %v165_v25 }
  0xc5   :  { %v247_v62 = vadd.f32 %v246_v51, %v241_v49 }
  0xc7   :  { %v250_v27 = vpop.permute.xlu1 %249 }
  0xc8   :  { %v252_v57 = vmul.f32 %v250_v27, %v175_v46 }
  0xca   :  { %v253_v59 = vadd.f32 %v252_v57, %v247_v62 }
  0xcc   :  { %v180_v48 = vpop.permute.xlu1 %179  ;;  %v259_v1 = vadd.f32 %v258_v53, %v253_v59 }
  0xcd   :  { %v186_v56 = vmul.f32 %v185_v39, %v180_v48 }
  0xcf   :  { %v187_v42 = vadd.f32 %v186_v56, %v177_v60 }
  0xd1   :  { %v190_v63 = vpop.permute.xlu1 %189 }
  0xd2   :  { %v196_v40 = vmul.f32 %v195_v61, %v190_v63 }
  0xd4   :  { %v197_v45 = vadd.f32 %v196_v40, %v187_v42 }
  0xd6   :  { %v198_v54 = vmul.f32 %v197_v45, %v59_v43  ;;  %v262_v0 = vpop.permute.xlu1 %261 }
  0xd7   :  { %v264_v2 = vmul.f32 %v262_v0, %v195_v61 }
  0xd8   :  { %v200_v3 = vsel %vm199_vm0, %v198_v54, 0.0 }
  0xd9   :  { %v201_v4 = vrot.slane %v200_v3, 4  ;;  %v265_v5 = vadd.f32 %v264_v2, %v259_v1 }
  0xdb   :  { %v202_v6 = vadd.f32 %v201_v4, %v200_v3  ;;  %v266_v55 = vmul.f32 %v265_v5, %v59_v43 }
  0xdd   :  { %v203_v7 = vrot.slane %v202_v6, 2  ;;  %v267_v8 = vsel %vm199_vm0, %v266_v55, 0.0 }
  0xde   :  { %v268_v9 = vrot.slane %v267_v8, 4 }
  0xdf   :  { %v204_v11 = vadd.f32 %v203_v7, %v202_v6 }
  0xe0   :  { %v269_v10 = vadd.f32 %v268_v9, %v267_v8 }
  0xe1   :  { %v205_v13 = vrot.slane %v204_v11, 1 }
  0xe2   :  { %v270_v12 = vrot.slane %v269_v10, 2 }
  0xe3   :  { %v206_v16 = vadd.f32 %v205_v13, %v204_v11 }
  0xe4   :  { %v271_v28 = vadd.f32 %v270_v12, %v269_v10 }
  0xe6   :  { %v272_v14 = vrot.slane %v271_v28, 1 }
  0xe8   :  { %v273_v17 = vadd.f32 %v272_v14, %v271_v28 }
  0xea   :  { %v275_v18 = vsel %vm274_vm1, %v206_v16, %v273_v17 }
  0xeb   :  { %v282_v19 = vadd.f32 %v280_v15, %v275_v18 }
  0xed   :  { %283 = vst [vmem:[#allocation2] sm:$0x3] %v282_v19 }
  0xee   :  { %358 = shalt.err (!%p355_p4)
}
  0xef   :  { %293 = dma.vmem_to_hbm [thread:$0]  %s291_s15, 32, %s508_s7, [#allocation3]  }
  0xf0   :  { %367 = dma.done.wait [#allocation3], 32  }
  0xf1   :  { %368 = vsyncadd [#allocation3], 4294967264 }
  0xf2   :  { %297 = vsyncpa [#allocation3], 1 }

</bundles_post_ra>
